<compile_context>
chip_gen: v6e
topology: v6e:2x2x1
jax: 0.10.0
libtpu: 0.0.40
codegen_flags: <defaults>
</compile_context>

<pallas_src>
import functools

import jax
import jax.numpy as jnp
from jax.experimental import pallas as pl
from jax.experimental.pallas import tpu as pltpu


HIDDEN = 64
_LANE = 128
_VMEM_BLOCK_BUDGET = 26 << 20   # per-step block budget; fits v7x's 64 MiB / TC
_VMEM_LIMIT_MIN = 32 << 20
_VMEM_LIMIT_MAX = 56 << 20


def _round_up(n, m):
    return ((n + m - 1) // m) * m


def _default_vpu_dtype():
    """bf16 elementwise math on v6e/v7x (bf16 VPU/EUP); f32 on v5e/older (no bf16 VPU)."""
    try:
        kind = jax.devices()[0].device_kind.lower()
    except Exception:
        return jnp.float32
    if "v6" in kind or "v7" in kind:
        return jnp.bfloat16
    return jnp.float32


def _critic_kernel(x_ref, w1_ref, b1_ref, w2_ref, b2_ref, w3_ref, b3_ref, out_ref,
                   *, vpu_dtype):
    # x arrives in its native dtype (no wrapper-side astype/pad HBM passes); cast
    # to bf16 here, right before the MXU, so HBM streams the original bytes once.
    x = x_ref[...].astype(jnp.bfloat16)

    # fc1 / fc2 on the MXU with f32 accumulation; tanh on the EUP in `vpu_dtype`
    # (bf16 on v6e/v7x halves EUP pushes on the binding slot; f32 on v5e).
    pre1 = jnp.dot(x, w1_ref[...], preferred_element_type=jnp.float32) + b1_ref[...]
    h1 = jnp.tanh(pre1.astype(vpu_dtype))
    pre2 = jnp.dot(h1.astype(jnp.bfloat16), w2_ref[...],
                   preferred_element_type=jnp.float32) + b2_ref[...]
    h2 = jnp.tanh(pre2.astype(vpu_dtype))

    # 64 -> 1 head: VPU multiply + XLU lane reduction in f32 (w3 is f32, so the
    # product promotes) instead of a degenerate N=1 MXU matmul.
    v = jnp.sum(h2 * w3_ref[...], axis=-1, keepdims=True) + b3_ref[0, 0]

    # (tb, 1) store: masked vst, but write traffic is <7% of the activation reads.
    out_ref[...] = v.astype(out_ref.dtype)


def _pick_tile_and_vmem(batch, in_dim, x_itemsize, vpu_itemsize, tile_b=None):
    """Choose the batch tile from a VMEM block budget and derive vmem_limit_bytes."""
    in_lanes = _round_up(in_dim, _LANE)
    hid_lanes = _round_up(HIDDEN, _LANE)
    # Per-row VMEM bytes for one grid step (lane dim pads to 128 in VMEM).
    bytes_per_row = (
        2 * in_lanes * x_itemsize        # double-buffered streamed x block
        + in_lanes * 2                   # in-kernel bf16 copy of x for the MXU
        + 2 * hid_lanes * 4              # f32 fc1/fc2 pre-activations
        + 2 * hid_lanes * vpu_itemsize   # h1/h2 tanh outputs
        + 2 * _LANE * 4                  # double-buffered (tb, 1) f32 output block
    )
    if tile_b is None:
        tb = _VMEM_BLOCK_BUDGET // bytes_per_row
        # >=4 grid steps for mid/large batches: with the "parallel" batch axis this
        # gives each of v7x's two TensorCores >=2 steps and keeps the DMA pipeline
        # primed; harmless on single-TC v5e/v6e.
        tb = min(tb, max(8, _round_up(pl.cdiv(batch, 4), 8)))
    else:
        tb = tile_b
    tb = min(tb, _round_up(batch, 8))
    tb = max(8, (tb // 8) * 8)           # sublane multiple of 8
    vmem_limit = tb * bytes_per_row + (4 << 20)   # + weights/biases/compiler headroom
    vmem_limit = min(max(vmem_limit, _VMEM_LIMIT_MIN), _VMEM_LIMIT_MAX)
    return int(tb), int(vmem_limit)


def critic_forward(x, params, *, tile_b=None, vpu_dtype=None):
    """Pallas implementation of Critic.forward.

    x: any array whose trailing two dims flatten so that the total is a multiple
       of in_dim (same semantics as torch flatten(ndim-2, -1).reshape(-1, in_dim)).
    params: dict with w1 (in_dim,64), b1 (1,64), w2 (64,64), b2 (1,64),
            w3 (1,64)  [PyTorch (out,in) orientation], b3 (1,1).
    Returns (B, 1) float32 values.
    """
    in_dim = params["w1"].shape[0]
    if x.ndim >= 2:
        x = x.reshape(x.shape[:-2] + (x.shape[-2] * x.shape[-1],))
    x2d = x.reshape(-1, in_dim)          # metadata-only; no extra HBM pass
    batch = x2d.shape[0]

    if vpu_dtype is None:
        vpu_dtype = _default_vpu_dtype()

    tb, vmem_limit = _pick_tile_and_vmem(
        batch, in_dim,
        jnp.dtype(x2d.dtype).itemsize, jnp.dtype(vpu_dtype).itemsize,
        tile_b=tile_b)
    num_tiles = pl.cdiv(batch, tb)       # ragged tail handled by Pallas masking

    # Weights/biases cast once (tiny, stay VMEM-resident); x streams untouched.
    w1 = params["w1"].astype(jnp.bfloat16)
    w2 = params["w2"].astype(jnp.bfloat16)
    b1 = params["b1"].astype(jnp.float32)
    b2 = params["b2"].astype(jnp.float32)
    w3 = params["w3"].astype(jnp.float32)   # (1, 64) PyTorch row, used on the VPU
    b3 = params["b3"].astype(jnp.float32)   # (1, 1) scalar -> SMEM

    def const(shape):
        return pl.BlockSpec(shape, lambda i: (0,) * len(shape))

    kernel = functools.partial(_critic_kernel, vpu_dtype=vpu_dtype)

    out = pl.pallas_call(
        kernel,
        out_shape=jax.ShapeDtypeStruct((batch, 1), jnp.float32),
        grid=(num_tiles,),
        in_specs=[
            pl.BlockSpec((tb, in_dim), lambda i: (i, 0)),        # streamed activations
            const(w1.shape),                                      # resident weights
            const(b1.shape),
            const(w2.shape),
            const(b2.shape),
            const(w3.shape),
            pl.BlockSpec(memory_space=pltpu.MemorySpace.SMEM),    # scalar head bias
        ],
        out_specs=pl.BlockSpec((tb, 1), lambda i: (i, 0)),
        compiler_params=pltpu.CompilerParams(
            dimension_semantics=("parallel",),
            vmem_limit_bytes=vmem_limit,
        ),
    )(x2d, w1, b1, w2, b2, w3, b3)

    return out


def init_critic_params(key, in_dim):
    """Deterministic synthetic init mirroring the torch module's shapes.

    w1/w2: orthogonal (gain=1), stored transposed as [in, out].
    w3:    orthogonal (gain=1), kept in PyTorch (out, in) = (1, 64) orientation.
    Biases: uniform(-1/sqrt(fan_in), 1/sqrt(fan_in)) like nn.Linear default.
    """
    k1, k2, k3, kb1, kb2, kb3 = jax.random.split(key, 6)
    ortho = jax.nn.initializers.orthogonal(scale=1.0)

    def bias(k, fan_in, n):
        bound = 1.0 / jnp.sqrt(jnp.float32(fan_in))
        return jax.random.uniform(k, (1, n), jnp.float32, minval=-bound, maxval=bound)

    return {
        "w1": ortho(k1, (in_dim, HIDDEN), jnp.float32),
        "b1": bias(kb1, in_dim, HIDDEN),
        "w2": ortho(k2, (HIDDEN, HIDDEN), jnp.float32),
        "b2": bias(kb2, HIDDEN, HIDDEN),
        "w3": ortho(k3, (1, HIDDEN), jnp.float32),
        "b3": bias(kb3, HIDDEN, 1),
    }


def _reference_forward(x, params):
    in_dim = params["w1"].shape[0]
    if x.ndim >= 2:
        x = x.reshape(x.shape[:-2] + (x.shape[-2] * x.shape[-1],))
    x2d = x.reshape(-1, in_dim).astype(jnp.float32)
    h1 = jnp.tanh(x2d @ params["w1"] + params["b1"])
    h2 = jnp.tanh(h1 @ params["w2"] + params["b2"])
    return h2 @ params["w3"].T + params["b3"]


if __name__ == "__main__":
    key = jax.random.PRNGKey(0)
    k_param, k_x1, k_x2 = jax.random.split(key, 3)

    in_dim = 32
    params = init_critic_params(k_param, in_dim)

    # Small case: [8, 4, 8] -> flatten last two dims -> (8, 32); single grid step.
    x_small = jax.random.normal(k_x1, (8, 4, 8), dtype=jnp.float32)
    v_small = jax.block_until_ready(critic_forward(x_small, params))
    ref_small = _reference_forward(x_small, params)
    assert v_small.shape == (8, 1), v_small.shape
    # bf16 MXU operands (+ bf16 tanh on v6e/v7x) -> loosened tolerance vs f32 ref.
    assert jnp.allclose(v_small, ref_small, atol=5e-2, rtol=5e-2), "mismatch (small)"

    # Multi-tile case with a partial last block (40 rows, tb=16): exercises the
    # ragged-tail masked writes, weight residency and the batch grid.
    x_multi = jax.random.normal(k_x2, (40, 4, 8), dtype=jnp.float32)
    v_multi = jax.block_until_ready(critic_forward(x_multi, params, tile_b=16))
    ref_multi = _reference_forward(x_multi, params)
    assert v_multi.shape == (40, 1), v_multi.shape
    assert jnp.allclose(v_multi, ref_multi, atol=5e-2, rtol=5e-2), "mismatch (multi)"

    print("KERNEL_OK")
</pallas_src>

<mosaic_0001>
module attributes {stable_mosaic.version = 11 : i64} {
  func.func @_critic_kernel(%arg0: i32, %arg1: memref<8x32xf32, #tpu.memory_space<vmem>>, %arg2: memref<32x64xbf16, #tpu.memory_space<vmem>>, %arg3: memref<1x64xf32, #tpu.memory_space<vmem>>, %arg4: memref<64x64xbf16, #tpu.memory_space<vmem>>, %arg5: memref<1x64xf32, #tpu.memory_space<vmem>>, %arg6: memref<1x64xf32, #tpu.memory_space<vmem>>, %arg7: memref<1x1xf32, #tpu.memory_space<smem>>, %arg8: memref<8x1xf32, #tpu.memory_space<vmem>>) attributes {dimension_semantics = [#tpu.dimension_semantics<parallel>], iteration_bounds = array<i64: 1>, scalar_prefetch = 0 : i64, scratch_operands = 0 : i64, tpu.core_type = #tpu.core_type<tc>, window_params = [{transform_indices = @transform_0, window_bounds = array<i64: 8, 32>}, {pipeline_mode = #tpu.pipeline_mode<synchronous>, transform_indices = @transform_1, window_bounds = array<i64: 32, 64>}, {pipeline_mode = #tpu.pipeline_mode<synchronous>, transform_indices = @transform_2, window_bounds = array<i64: 1, 64>}, {pipeline_mode = #tpu.pipeline_mode<synchronous>, transform_indices = @transform_3, window_bounds = array<i64: 64, 64>}, {pipeline_mode = #tpu.pipeline_mode<synchronous>, transform_indices = @transform_4, window_bounds = array<i64: 1, 64>}, {pipeline_mode = #tpu.pipeline_mode<synchronous>, transform_indices = @transform_5, window_bounds = array<i64: 1, 64>}, {transform_indices = @transform_6, window_bounds = array<i64: 1, 1>}, {transform_indices = @transform_7, window_bounds = array<i64: 8, 1>}]} {
    %c0 = arith.constant 0 : index
    %c0_0 = arith.constant 0 : index
    %0 = vector.load %arg1[%c0, %c0_0] : memref<8x32xf32, #tpu.memory_space<vmem>>, vector<8x32xf32>
    %1 = arith.truncf %0 : vector<8x32xf32> to vector<8x32xbf16>
    %c0_1 = arith.constant 0 : index
    %c0_2 = arith.constant 0 : index
    %2 = vector.load %arg2[%c0_1, %c0_2] : memref<32x64xbf16, #tpu.memory_space<vmem>>, vector<32x64xbf16>
    %cst = arith.constant dense<0.000000e+00> : vector<8x64xf32>
    %3 = tpu.matmul %1, %2, %cst {dimension_numbers = #tpu.dot_dimension_numbers<[1], [0], [0], [1], [0, 0, 1, 1], [], []>} : vector<8x32xbf16>, vector<32x64xbf16>, vector<8x64xf32> -> vector<8x64xf32>
    %c0_3 = arith.constant 0 : index
    %c0_4 = arith.constant 0 : index
    %4 = vector.load %arg3[%c0_3, %c0_4] : memref<1x64xf32, #tpu.memory_space<vmem>>, vector<1x64xf32>
    %5 = vector.broadcast %4 : vector<1x64xf32> to vector<8x64xf32>
    %6 = arith.addf %3, %5 : vector<8x64xf32>
    %7 = math.tanh %6 : vector<8x64xf32>
    %8 = arith.truncf %7 : vector<8x64xf32> to vector<8x64xbf16>
    %c0_5 = arith.constant 0 : index
    %c0_6 = arith.constant 0 : index
    %9 = vector.load %arg4[%c0_5, %c0_6] : memref<64x64xbf16, #tpu.memory_space<vmem>>, vector<64x64xbf16>
    %cst_7 = arith.constant dense<0.000000e+00> : vector<8x64xf32>
    %10 = tpu.matmul %8, %9, %cst_7 {dimension_numbers = #tpu.dot_dimension_numbers<[1], [0], [0], [1], [0, 0, 1, 1], [], []>} : vector<8x64xbf16>, vector<64x64xbf16>, vector<8x64xf32> -> vector<8x64xf32>
    %c0_8 = arith.constant 0 : index
    %c0_9 = arith.constant 0 : index
    %11 = vector.load %arg5[%c0_8, %c0_9] : memref<1x64xf32, #tpu.memory_space<vmem>>, vector<1x64xf32>
    %12 = vector.broadcast %11 : vector<1x64xf32> to vector<8x64xf32>
    %13 = arith.addf %10, %12 : vector<8x64xf32>
    %14 = math.tanh %13 : vector<8x64xf32>
    %c0_10 = arith.constant 0 : index
    %c0_11 = arith.constant 0 : index
    %15 = vector.load %arg6[%c0_10, %c0_11] : memref<1x64xf32, #tpu.memory_space<vmem>>, vector<1x64xf32>
    %16 = vector.broadcast %15 : vector<1x64xf32> to vector<8x64xf32>
    %17 = arith.mulf %14, %16 : vector<8x64xf32>
    %cst_12 = arith.constant dense<0.000000e+00> : vector<8xf32>
    %18 = vector.multi_reduction <add>, %17, %cst_12 [1] : vector<8x64xf32> to vector<8xf32>
    %19 = vector.shape_cast %18 : vector<8xf32> to vector<8x1xf32>
    %c0_13 = arith.constant 0 : index
    %c0_14 = arith.constant 0 : index
    %20 = memref.load %arg7[%c0_13, %c0_14] : memref<1x1xf32, #tpu.memory_space<smem>>
    %21 = vector.broadcast %20 : f32 to vector<8x1xf32>
    %22 = arith.addf %19, %21 : vector<8x1xf32>
    %c0_15 = arith.constant 0 : index
    %c0_16 = arith.constant 0 : index
    %23 = vector.load %arg8[%c0_15, %c0_16] : memref<8x1xf32, #tpu.memory_space<vmem>>, vector<8x1xf32>
    tpu.vector_store %arg8[%c0_15, %c0_16], %22 {strides = array<i32>} : memref<8x1xf32, #tpu.memory_space<vmem>>, vector<8x1xf32>,
    return
  }
  func.func @transform_0(%arg0: i32) -> (i32, i32) {
    %c0_i32 = arith.constant 0 : i32
    %c0_i32_0 = arith.constant 0 : i32
    return %arg0, %c0_i32 : i32, i32
  }
  func.func @transform_1(%arg0: i32) -> (i32, i32) {
    %c0_i32 = arith.constant 0 : i32
    %c0_i32_0 = arith.constant 0 : i32
    %c0_i32_1 = arith.constant 0 : i32
    return %c0_i32, %c0_i32_0 : i32, i32
  }
  func.func @transform_2(%arg0: i32) -> (i32, i32) {
    %c0_i32 = arith.constant 0 : i32
    %c0_i32_0 = arith.constant 0 : i32
    %c0_i32_1 = arith.constant 0 : i32
    return %c0_i32, %c0_i32_0 : i32, i32
  }
  func.func @transform_3(%arg0: i32) -> (i32, i32) {
    %c0_i32 = arith.constant 0 : i32
    %c0_i32_0 = arith.constant 0 : i32
    %c0_i32_1 = arith.constant 0 : i32
    return %c0_i32, %c0_i32_0 : i32, i32
  }
  func.func @transform_4(%arg0: i32) -> (i32, i32) {
    %c0_i32 = arith.constant 0 : i32
    %c0_i32_0 = arith.constant 0 : i32
    %c0_i32_1 = arith.constant 0 : i32
    return %c0_i32, %c0_i32_0 : i32, i32
  }
  func.func @transform_5(%arg0: i32) -> (i32, i32) {
    %c0_i32 = arith.constant 0 : i32
    %c0_i32_0 = arith.constant 0 : i32
    %c0_i32_1 = arith.constant 0 : i32
    return %c0_i32, %c0_i32_0 : i32, i32
  }
  func.func @transform_6(%arg0: i32) -> (i32, i32) {
    %c0_i32 = arith.constant 0 : i32
    %c0_i32_0 = arith.constant 0 : i32
    %c0_i32_1 = arith.constant 0 : i32
    return %c0_i32, %c0_i32_0 : i32, i32
  }
  func.func @transform_7(%arg0: i32) -> (i32, i32) {
    %c0_i32 = arith.constant 0 : i32
    %c0_i32_0 = arith.constant 0 : i32
    return %arg0, %c0_i32 : i32, i32
  }
}

</mosaic_0001>

<bundles_post_ra>
// kernel: tpu_custom_call.1
= control target key start
LH: loop header
LB: loop body
LE: loop exit
PB: predicated region body
PF: predicated region fallthrough
CT: control target
= control target key end

     0   :  { %13 = vsyncpa [#allocation4], 0  ;;  %s435_s0 = inlined_call_operand.hbm [shape: f32[8,32], index: 0, kind: input, shape index: {}]   ;;  %s436_s1 = inlined_call_operand.hbm [shape: bf16[32,64], index: 1, kind: input, shape index: {}]   ;;  %s437_s2 = inlined_call_operand.vmem [shape: f32[1,64], index: 2, kind: input, shape index: {}]   ;;  %s438_s3 = inlined_call_operand.hbm [shape: bf16[64,64], index: 3, kind: input, shape index: {}]   ;;  %s439_s4 = inlined_call_operand.vmem [shape: f32[1,64], index: 4, kind: input, shape index: {}]   ;;  %s440_s5 = inlined_call_operand.vmem [shape: f32[1,64], index: 5, kind: input, shape index: {}]   ;;  %s441_s6 = inlined_call_operand.<no memory space> [shape: f32[1,1], index: 6, kind: input, shape index: {}]   ;;  %s442_s7 = inlined_call_operand.vmem [shape: f32[8,1], index: 7, kind: output, shape index: {}]  }
   0x1   :  { %14 = vsyncpa [#allocation6], 0  ;;  %s364_s24 = smov [#allocation5]  }
   0x2   :  { %s30_s25 = sshll.u32 %s364_s24, 4  ;;  %s31_s25 = int_to_ptr.vmem [resolvable:$true] %s30_s25 }
   0x3   :  { %s308_s26 = scalar_lea.vmem %s31_s25, 256  ;;  %p313_p1 = scmp.lt.s32.totalorder %s31_s25, %s31_s25 }
   0x4   :  { %p309_p0 = scmp.ne.s32.totalorder %s31_s25, %s308_s26  ;;  %p314_p2 = scmp.lt.s32.totalorder %s308_s26, %s308_s26 }
   0x6   :  { %p315_p3 = por %p314_p2, %p313_p1 }
   0x8   :  { %p316_p4 = pnand %p315_p3, %p309_p0 }
   0xa   :  { %319 = shalt.err (!%p316_p4)
}
   0xb   :  { %s365_s27 = smov 64   ;;  %s366_s28 = smov 4  }
   0xc   :  { %36 = dma.hbm_to_vmem [thread:$0]  %s436_s1, 256, %s31_s25, [#allocation6], %s365_s27, %s365_s27, %s366_s28  }
   0xd   :  { %s367_s8 = smov [#allocation3]   ;;  %s368_s10 = smov [#allocation7]  }
   0xe   :  { %s21_s9 = sshll.u32 %s367_s8, 4  ;;  %s44_s11 = sshll.u32 %s368_s10, 4  ;;  %s22_s9 = int_to_ptr.vmem [resolvable:$true] %s21_s9  ;;  %s45_s11 = int_to_ptr.vmem [resolvable:$true] %s44_s11 }
   0xf   :  { %s328_s12 = scalar_lea.vmem %s22_s9, 128  ;;  %p333_p6 = scmp.lt.s32.totalorder %s22_s9, %s22_s9 }
  0x10   :  { %p329_p5 = scmp.ne.s32.totalorder %s22_s9, %s328_s12  ;;  %p334_p7 = scmp.lt.s32.totalorder %s328_s12, %s328_s12 }
  0x12   :  { %p335_p8 = por %p334_p7, %p333_p6 }
  0x14   :  { %p336_p9 = pnand %p335_p8, %p329_p5 }
  0x16   :  { %339 = shalt.err (!%p336_p9)
}
  0x17   :  { %24 = dma.hbm_to_vmem [thread:$0]  %s435_s0, 128, %s22_s9, [#allocation4]  }
  0x18   :  { %s348_s15 = scalar_lea.vmem %s45_s11, 512  ;;  %p353_p11 = scmp.lt.s32.totalorder %s45_s11, %s45_s11 }
  0x19   :  { %p349_p10 = scmp.ne.s32.totalorder %s45_s11, %s348_s15  ;;  %p354_p12 = scmp.lt.s32.totalorder %s348_s15, %s348_s15 }
  0x1b   :  { %p355_p13 = por %p354_p12, %p353_p11 }
  0x1d   :  { %p356_p0 = pnand %p355_p13, %p349_p10 }
  0x1f   :  { %359 = shalt.err (!%p356_p0)
}
  0x20   :  { %50 = dma.hbm_to_vmem [thread:$0]  %s438_s3, 512, %s45_s11, [#allocation6], %s365_s27, %s365_s27, %s366_s28  }
  0x21   :  { %360 = dma.done.wait [#allocation4], 128  }
  0x22   :  { %361 = vsyncadd [#allocation4], 4294967168 }
  0x23   :  { %362 = dma.done.wait [#allocation6], 768  }
  0x24   :  { %363 = vsyncadd [#allocation6], 4294966528  ;;  %v369_v0 = vmov 0.0   ;;  %vm370_vm0 = vmmov 0   ;;  %v290_v1 = vld [vmem:[#allocation5 + $0x8] sm:$0xff]   ;;  %v291_v2 = vld [vmem:[#allocation5] sm:$0xff]   ;;  %v234_v27 = vstv %s441_s6 }
  0x25   :  { %263 = vmatprep.subr.bf16.mxu0 %v369_v0  ;;  %267 = vmatprep.mubr.msk.bf16.mxu0 %vm370_vm0, %v369_v0  ;;  %v67_v3 = vld [vmem:[#allocation3] sm:$0xff]  ;;  %vm92_vm1 = vcmask 261120   ;;  %v292_v5 = vld [vmem:[#allocation7 + $0x18] sm:$0xff]   ;;  %v293_v6 = vld [vmem:[#allocation7 + $0x10] sm:$0xff]   ;;  %vm177_vm2 = vcmask 523264   ;;  %vm236_vm3 = vcmask 7168  }
  0x26   :  { %271 = vmatprep.subr.bf16.mxu1 %v369_v0  ;;  %279 = vmatprep.mubr.msk.bf16.mxu1 %vm370_vm0, %v369_v0  ;;  %v68_v4 = vpack.c.bf16 %v67_v3, %v67_v3  ;;  %v294_v7 = vld [vmem:[#allocation7 + $0x8] sm:$0xff]   ;;  %v295_v8 = vld [vmem:[#allocation7] sm:$0xff]  }
  0x27   :  { %264 = vmatpush3.bf16.msra.mxu0 %v290_v1  ;;  %272 = vmatpush3.bf16.msra.mxu1 %v292_v5  ;;  %v244_v9 = vld [vmem:[%s437_s2] ss:$0 sm:$0xff] }
  0x28   :  { %265 = vmatprep.subr.bf16.mxu0 %v369_v0  ;;  %273 = vmatprep.subr.bf16.mxu1 %v369_v0  ;;  %v248_v17 = vld [vmem:[%s439_s4] ss:$0 sm:$0xff] }
  0x29   :  { %v254_v23 = vld [vmem:[%s440_s5] ss:$0 sm:$0xff] }
  0x2b   :  { %266 = vmatpush3.bf16.msra.mxu0 %v291_v2  ;;  %274 = vmatpush3.bf16.msra.mxu1 %v293_v6 }
  0x2c   :  { %275 = vmatprep.subr.bf16.mxu1 %v369_v0 }
  0x2e   :  { %268 = vmatmul.mubr.msk.bf16.vlgmr.msra.gmra.mxu0 %vm92_vm1, %v68_v4 }
  0x2f   :  { %276 = vmatpush3.bf16.msra.mxu1 %v294_v7 }
  0x30   :  { %277 = vmatprep.subr.bf16.mxu1 %v369_v0 }
  0x33   :  { %278 = vmatpush3.bf16.msra.mxu1 %v295_v8 }
  0xee   :  { %v130_v10 = vpop.f32.mrf.mxu0 }
  0xef   :  { %v131_v11 = vadd.f32 %v244_v9, %v130_v10 }
  0xf0   :  { %v269_v12 = vpop.f32.mrf.mxu0 }
  0xf1   :  { %296 = vtanh.f32 %v131_v11 }
  0xf2   :  { %v133_v13 = vpop.f32.mrf.mxu0 }
  0xf4   :  { %v270_v14 = vpop.f32.mrf.mxu0 }
  0xfe   :  { %v297_v15 = vpop.eup %296 }
  0xff   :  { %v137_v16 = vpack.c.bf16 %v297_v15, %v297_v15 }
 0x101   :  { %280 = vmatmul.mubr.msk.bf16.vlgmr.msra.gmra.mxu1 %vm177_vm2, %v137_v16 }
 0x1c1   :  { %v215_v18 = vpop.f32.mrf.mxu1 }
 0x1c2   :  { %v216_v19 = vadd.f32 %v248_v17, %v215_v18 }
 0x1c3   :  { %v281_v20 = vpop.f32.mrf.mxu1 }
 0x1c4   :  { %298 = vtanh.f32 %v216_v19 }
 0x1c5   :  { %v218_v21 = vpop.f32.mrf.mxu1 }
 0x1c7   :  { %v282_v22 = vpop.f32.mrf.mxu1 }
 0x1d1   :  { %v299_v24 = vpop.eup %298 }
 0x1d2   :  { %v229_v25 = vmul.f32 %v299_v24, %v254_v23 }
 0x1d4   :  { %v230_v26 = vsel %vm177_vm2, %v229_v25, 0.0 }
 0x1d5   :  { %231 = vadd.xlane.f32.xlu0 %v230_v26 }
 0x25e   :  { %v232_v28 = vpop.xlane.xlu0 %231 }
 0x25f   :  { %v235_v29 = vadd.f32 %v234_v27, %v232_v28 }
 0x261   :  { %237 = vst.msk [vmem:[%s442_s7] sm:$0xff] %vm236_vm3, %v235_v29 }
 0x262   :  { %242 = vsyncpa [#allocation4], 1 }
 0x263   :  { %243 = vsyncpa [#allocation6], 1 }

</bundles_post_ra>
